<compile_context>
chip_gen: v6e
topology: v6e:2x2x1
jax: 0.10.0
libtpu: 0.0.40
codegen_flags: <defaults>
</compile_context>

<pallas_src>
import functools

import jax
import jax.numpy as jnp
from jax import lax
from jax.experimental import pallas as pl
from jax.experimental.pallas import tpu as pltpu

_LANES = 128
_SUBLANES = 8
_ROW_ALIGN = 32      # satisfies f32 (8,128), bf16 (16,128) and int8 (32,128) tiling
_NUM_ACCS = 4        # [sum pos, sum unl, sum pos*y_pos, sum unl*y_pos]


def _nnpu_partial_kernel(x_ref, t_ref, out_ref, *,
                         tile_rows, tiles_per_core, num_tiles, n_valid,
                         needs_mask, positive_class, unlabeled_class):
    c = pl.program_id(0)          # core / parallel axis
    i = pl.program_id(1)          # tile / reduction axis

    @pl.when(i == 0)
    def _init():
        out_ref[...] = jnp.zeros_like(out_ref)

    x = x_ref[...].astype(jnp.float32)     # (tile_rows, 128) logits
    t = t_ref[...].astype(jnp.int32)       # (tile_rows, 128) labels (int8 in HBM)

    is_pos = t == positive_class
    is_unl = t == unlabeled_class

    if needs_mask:
        # Padding / partial (or clamped duplicate) blocks exist: mask every
        # element whose global index is >= n.  Compiled in only when needed,
        # so the tile-aligned fast path pays zero VPU cost for it.
        tile_idx = c * tiles_per_core + i
        base = tile_idx * (tile_rows * _LANES)
        idx = (base
               + lax.broadcasted_iota(jnp.int32, x.shape, 0) * _LANES
               + lax.broadcasted_iota(jnp.int32, x.shape, 1))
        valid = idx < n_valid
        is_pos = jnp.logical_and(is_pos, valid)
        is_unl = jnp.logical_and(is_unl, valid)

    # Single transcendental per element: y_pos = loss(x) = sigmoid(-x);
    # loss(-x) = sigmoid(x) = 1 - y_pos is reconstructed in the epilogue.
    y_pos = jax.nn.sigmoid(-x)

    pos_cnt_t = jnp.where(is_pos, 1.0, 0.0)
    unl_cnt_t = jnp.where(is_unl, 1.0, 0.0)
    pos_yp_t = jnp.where(is_pos, y_pos, 0.0)
    unl_yp_t = jnp.where(is_unl, y_pos, 0.0)

    def collapse(v):
        # (tile_rows, 128) -> (8, 128): pure vreg-wise VPU adds; cross-lane
        # work is deferred to the wrapper epilogue.
        return jnp.sum(v.reshape(tile_rows // _SUBLANES, _SUBLANES, _LANES),
                       axis=0)

    out_ref[0, 0, :, :] += collapse(pos_cnt_t)
    out_ref[0, 1, :, :] += collapse(unl_cnt_t)
    out_ref[0, 2, :, :] += collapse(pos_yp_t)
    out_ref[0, 3, :, :] += collapse(unl_yp_t)


def nnpu_loss(x, t, *, prior, positive_class=1, gamma=1.0, beta=0.0,
              nnpu=True, max_tile_rows=4096):
    """Pallas implementation of NonNegativePULoss.forward(x, t).

    x: (N, 1) or (N,) float scores (f32 or bf16); t: (N,) integer labels.
    Returns a scalar float32 loss.  Tuning: max_tile_rows=4096 default
    (~5 MiB VMEM double-buffered); 8192 is a good choice on v7x.
    """
    del gamma  # only affects the (detach-based) backward pass, not the forward value
    n = x.shape[0]
    x_flat = jnp.reshape(x, (n,))                       # keep producer dtype
    t_flat = jnp.reshape(t, (n,))
    if t_flat.dtype != jnp.int8:
        t_flat = t_flat.astype(jnp.int8)                # 1 byte/label in HBM

    rows = pl.cdiv(n, _LANES)
    rows_aligned = pl.cdiv(rows, _ROW_ALIGN) * _ROW_ALIGN
    req_rows = max(_ROW_ALIGN, (int(max_tile_rows) // _ROW_ALIGN) * _ROW_ALIGN)
    tile_rows = min(req_rows, rows_aligned)
    num_tiles = pl.cdiv(rows, tile_rows)
    num_cores = 2 if num_tiles >= 2 else 1              # v7x: 2 TCs; no-op elsewhere
    tiles_per_core = pl.cdiv(num_tiles, num_cores)
    total_elems = num_cores * tiles_per_core * tile_rows * _LANES
    needs_mask = total_elems != n

    # Only pad up to the next multiple of 128 lanes (and only when needed);
    # everything else (partial / duplicated blocks) is handled by the in-kernel
    # index mask, so no full-array pad copy on the lane-aligned fast path.
    n128 = rows * _LANES
    if n128 != n:
        x_flat = jnp.pad(x_flat, (0, n128 - n))
        t_flat = jnp.pad(t_flat, (0, n128 - n), constant_values=-1)
    x_2d = x_flat.reshape(rows, _LANES)
    t_2d = t_flat.reshape(rows, _LANES)

    kernel = functools.partial(
        _nnpu_partial_kernel,
        tile_rows=tile_rows,
        tiles_per_core=tiles_per_core,
        num_tiles=num_tiles,
        n_valid=int(n),
        needs_mask=bool(needs_mask),
        positive_class=int(positive_class),
        unlabeled_class=int(1 - positive_class),
    )

    def in_index_map(c, i):
        # Clamp so a core whose range overruns the tile count re-reads the last
        # valid tile; those duplicated reads are fully masked in the kernel.
        return (jnp.minimum(c * tiles_per_core + i, num_tiles - 1), 0)

    parts = pl.pallas_call(
        kernel,
        out_shape=jax.ShapeDtypeStruct(
            (num_cores, _NUM_ACCS, _SUBLANES, _LANES), jnp.float32),
        grid=(num_cores, tiles_per_core),
        in_specs=[
            pl.BlockSpec((tile_rows, _LANES), in_index_map),
            pl.BlockSpec((tile_rows, _LANES), in_index_map),
        ],
        out_specs=pl.BlockSpec((1, _NUM_ACCS, _SUBLANES, _LANES),
                               lambda c, i: (c, 0, 0, 0)),
        compiler_params=pltpu.CompilerParams(
            dimension_semantics=("parallel", "arbitrary")),
    )(x_2d, t_2d)

    # Scalar epilogue (pure JAX): combine per-core partials and apply the nnPU
    # branch.  sum pos*y_unl = sum pos - sum pos*y_pos (and likewise for unl)
    # since loss(-x) = 1 - loss(x) for the sigmoid surrogate.
    sums = jnp.sum(parts, axis=(0, 2, 3))
    s_pos, s_unl, s_pos_yp, s_unl_yp = sums[0], sums[1], sums[2], sums[3]
    n_positive = jnp.maximum(1.0, s_pos)
    n_unlabeled = jnp.maximum(1.0, s_unl)
    w_pos = prior / n_positive
    positive_risk = w_pos * s_pos_yp
    negative_risk = (s_unl - s_unl_yp) / n_unlabeled - w_pos * (s_pos - s_pos_yp)
    if nnpu:
        # Forward value of the detach-corrected branch reduces to pos_risk - beta.
        objective = jnp.where(negative_risk < -beta,
                              positive_risk - beta,
                              positive_risk + negative_risk)
    else:
        objective = positive_risk + negative_risk
    return objective


def _reference(x, t, *, prior, positive_class=1, gamma=1.0, beta=0.0,
               nnpu=True):
    """Pure-JAX reference mirroring the PyTorch forward."""
    t = t[:, None].astype(jnp.float32)
    x = x.astype(jnp.float32)
    positive = (t == positive_class).astype(jnp.float32)
    unlabeled = (t == (1 - positive_class)).astype(jnp.float32)
    n_positive = jnp.maximum(1.0, positive.sum())
    n_unlabeled = jnp.maximum(1.0, unlabeled.sum())
    y_positive = jax.nn.sigmoid(-x)
    y_unlabeled = jax.nn.sigmoid(x)
    positive_risk = jnp.sum(prior * positive / n_positive * y_positive)
    negative_risk = jnp.sum(
        (unlabeled / n_unlabeled - prior * positive / n_positive) * y_unlabeled)
    if nnpu:
        corrected = (positive_risk - beta + gamma * negative_risk) \
            - gamma * negative_risk
        return jnp.where(negative_risk < -beta,
                         corrected, positive_risk + negative_risk)
    return positive_risk + negative_risk


if __name__ == "__main__":
    PRIOR = 0.3
    GAMMA = 1.0
    BETA = 0.0

    # Case 1: tiny batch (N=8), int32 labels -> cast path, single partial tile.
    kx, kt = jax.random.split(jax.random.PRNGKey(0))
    N1 = 8
    x1 = jax.random.normal(kx, (N1, 1), dtype=jnp.float32)
    t1 = (jax.random.uniform(kt, (N1,)) < 0.5).astype(jnp.int32)
    loss1 = jax.block_until_ready(
        nnpu_loss(x1, t1, prior=PRIOR, gamma=GAMMA, beta=BETA, nnpu=True))
    ref1 = _reference(x1, t1, prior=PRIOR, gamma=GAMMA, beta=BETA, nnpu=True)
    assert jnp.allclose(loss1, ref1, atol=1e-5, rtol=1e-4), (loss1, ref1)

    # Case 2: lane/tile-aligned fast path (no pad, no mask), int8 labels.
    kx2, kt2 = jax.random.split(jax.random.PRNGKey(1))
    N2 = 8192
    x2 = jax.random.normal(kx2, (N2, 1), dtype=jnp.float32)
    t2 = (jax.random.uniform(kt2, (N2,)) < 0.3).astype(jnp.int8)
    loss2 = jax.block_until_ready(
        nnpu_loss(x2, t2, prior=PRIOR, gamma=GAMMA, beta=BETA, nnpu=True))
    ref2 = _reference(x2, t2, prior=PRIOR, gamma=GAMMA, beta=BETA, nnpu=True)
    assert jnp.allclose(loss2, ref2, atol=1e-5, rtol=1e-4), (loss2, ref2)

    # Case 3: ragged N with small tiles -> multi-tile 2-core grid, odd tile
    # count (exercises the clamped duplicate tile + in-kernel index mask).
    kx3, kt3 = jax.random.split(jax.random.PRNGKey(2))
    N3 = 20000
    x3 = jax.random.normal(kx3, (N3, 1), dtype=jnp.float32)
    t3 = (jax.random.uniform(kt3, (N3,)) < 0.3).astype(jnp.int8)
    loss3 = jax.block_until_ready(
        nnpu_loss(x3, t3, prior=PRIOR, gamma=GAMMA, beta=BETA, nnpu=True,
                  max_tile_rows=32))
    ref3 = _reference(x3, t3, prior=PRIOR, gamma=GAMMA, beta=BETA, nnpu=True)
    assert jnp.allclose(loss3, ref3, atol=1e-5, rtol=1e-4), (loss3, ref3)

    print("KERNEL_OK")
</pallas_src>

<mosaic_0001>
module attributes {stable_mosaic.version = 11 : i64} {
  func.func @_nnpu_partial_kernel(%arg0: i32, %arg1: i32, %arg2: memref<32x128xf32, #tpu.memory_space<vmem>>, %arg3: memref<32x128xi8, #tpu.memory_space<vmem>>, %arg4: memref<1x4x8x128xf32, #tpu.memory_space<vmem>>) attributes {dimension_semantics = [#tpu.dimension_semantics<parallel>, #tpu.dimension_semantics<arbitrary>], iteration_bounds = array<i64: 1, 1>, scalar_prefetch = 0 : i64, scratch_operands = 0 : i64, tpu.core_type = #tpu.core_type<tc>, window_params = [{transform_indices = @transform_0, window_bounds = array<i64: 32, 128>}, {transform_indices = @transform_1, window_bounds = array<i64: 32, 128>}, {transform_indices = @transform_2, window_bounds = array<i64: 1, 4, 8, 128>}]} {
    %c0_i32 = arith.constant 0 : i32
    %0 = arith.cmpi eq, %arg1, %c0_i32 : i32
    %1 = arith.extui %0 : i1 to i32
    %c0_i32_0 = arith.constant 0 : i32
    %2 = arith.cmpi ne, %1, %c0_i32_0 : i32
    scf.if %2 {
      %cst_46 = arith.constant 0.000000e+00 : f32
      %73 = vector.broadcast %cst_46 : f32 to vector<1x4x8x128xf32>
      %c0_47 = arith.constant 0 : index
      %c0_48 = arith.constant 0 : index
      %c0_49 = arith.constant 0 : index
      %c0_50 = arith.constant 0 : index
      %74 = vector.load %arg4[%c0_47, %c0_48, %c0_49, %c0_50] : memref<1x4x8x128xf32, #tpu.memory_space<vmem>>, vector<1x4x8x128xf32>
      tpu.vector_store %arg4[%c0_47, %c0_48, %c0_49, %c0_50], %73 {strides = array<i32>} : memref<1x4x8x128xf32, #tpu.memory_space<vmem>>, vector<1x4x8x128xf32>,
    } else {
    }
    %c0 = arith.constant 0 : index
    %c0_1 = arith.constant 0 : index
    %3 = vector.load %arg2[%c0, %c0_1] : memref<32x128xf32, #tpu.memory_space<vmem>>, vector<32x128xf32>
    %c0_2 = arith.constant 0 : index
    %c0_3 = arith.constant 0 : index
    %4 = vector.load %arg3[%c0_2, %c0_3] : memref<32x128xi8, #tpu.memory_space<vmem>>, vector<32x128xi8>
    %5 = arith.extsi %4 : vector<32x128xi8> to vector<32x128xi32>
    %c1_i32 = arith.constant 1 : i32
    %6 = vector.broadcast %c1_i32 : i32 to vector<32x128xi32>
    %7 = arith.cmpi eq, %5, %6 : vector<32x128xi32>
    %c0_i32_4 = arith.constant 0 : i32
    %8 = vector.broadcast %c0_i32_4 : i32 to vector<32x128xi32>
    %9 = arith.cmpi eq, %5, %8 : vector<32x128xi32>
    %c1_i32_5 = arith.constant 1 : i32
    %10 = arith.muli %arg0, %c1_i32_5 : i32
    %11 = arith.addi %10, %arg1 : i32
    %c4096_i32 = arith.constant 4096 : i32
    %12 = arith.muli %11, %c4096_i32 : i32
    %13 = tpu.iota {dimensions = array<i32: 0>} : vector<32x128xi32>
    %c128_i32 = arith.constant 128 : i32
    %14 = vector.broadcast %c128_i32 : i32 to vector<32x128xi32>
    %15 = arith.muli %13, %14 : vector<32x128xi32>
    %16 = vector.broadcast %12 : i32 to vector<32x128xi32>
    %17 = arith.addi %16, %15 : vector<32x128xi32>
    %18 = tpu.iota {dimensions = array<i32: 1>} : vector<32x128xi32>
    %19 = arith.addi %17, %18 : vector<32x128xi32>
    %c8_i32 = arith.constant 8 : i32
    %20 = vector.broadcast %c8_i32 : i32 to vector<32x128xi32>
    %21 = arith.cmpi slt, %19, %20 : vector<32x128xi32>
    %22 = arith.andi %7, %21 : vector<32x128xi1>
    %23 = arith.andi %9, %21 : vector<32x128xi1>
    %cst = arith.constant 0.000000e+00 : f32
    %24 = vector.broadcast %cst : f32 to vector<32x128xf32>
    %25 = arith.subf %24, %3 : vector<32x128xf32>
    %26 = arith.negf %25 : vector<32x128xf32>
    %27 = math.exp %26 : vector<32x128xf32>
    %cst_6 = arith.constant 1.000000e+00 : f32
    %28 = vector.broadcast %cst_6 : f32 to vector<32x128xf32>
    %29 = arith.addf %28, %27 : vector<32x128xf32>
    %30 = arith.divf %28, %29 : vector<32x128xf32>
    %cst_7 = arith.constant 1.000000e+00 : f32
    %cst_8 = arith.constant 0.000000e+00 : f32
    %31 = vector.broadcast %cst_7 : f32 to vector<32x128xf32>
    %32 = vector.broadcast %cst_8 : f32 to vector<32x128xf32>
    %33 = arith.select %22, %31, %32 : vector<32x128xi1>, vector<32x128xf32>
    %cst_9 = arith.constant 1.000000e+00 : f32
    %cst_10 = arith.constant 0.000000e+00 : f32
    %34 = vector.broadcast %cst_9 : f32 to vector<32x128xf32>
    %35 = vector.broadcast %cst_10 : f32 to vector<32x128xf32>
    %36 = arith.select %23, %34, %35 : vector<32x128xi1>, vector<32x128xf32>
    %cst_11 = arith.constant 0.000000e+00 : f32
    %37 = vector.broadcast %cst_11 : f32 to vector<32x128xf32>
    %38 = arith.select %22, %30, %37 : vector<32x128xi1>, vector<32x128xf32>
    %cst_12 = arith.constant 0.000000e+00 : f32
    %39 = vector.broadcast %cst_12 : f32 to vector<32x128xf32>
    %40 = arith.select %23, %30, %39 : vector<32x128xi1>, vector<32x128xf32>
    %c0_13 = arith.constant 0 : index
    %c0_14 = arith.constant 0 : index
    %c0_15 = arith.constant 0 : index
    %c0_16 = arith.constant 0 : index
    %41 = vector.load %arg4[%c0_13, %c0_14, %c0_15, %c0_16] : memref<1x4x8x128xf32, #tpu.memory_space<vmem>>, vector<1x1x8x128xf32>
    %42 = vector.shape_cast %41 : vector<1x1x8x128xf32> to vector<8x128xf32>
    %43 = vector.shape_cast %33 : vector<32x128xf32> to vector<4x8x128xf32>
    %cst_17 = arith.constant dense<0.000000e+00> : vector<8x128xf32>
    %44 = vector.multi_reduction <add>, %43, %cst_17 [0] : vector<4x8x128xf32> to vector<8x128xf32>
    %45 = arith.addf %42, %44 : vector<8x128xf32>
    %c0_18 = arith.constant 0 : index
    %c0_19 = arith.constant 0 : index
    %c0_20 = arith.constant 0 : index
    %c0_21 = arith.constant 0 : index
    %46 = vector.load %arg4[%c0_18, %c0_19, %c0_20, %c0_21] : memref<1x4x8x128xf32, #tpu.memory_space<vmem>>, vector<1x1x8x128xf32>
    %47 = vector.shape_cast %46 : vector<1x1x8x128xf32> to vector<8x128xf32>
    %48 = vector.shape_cast %45 : vector<8x128xf32> to vector<1x1x8x128xf32>
    tpu.vector_store %arg4[%c0_18, %c0_19, %c0_20, %c0_21], %48 {strides = array<i32>} : memref<1x4x8x128xf32, #tpu.memory_space<vmem>>, vector<1x1x8x128xf32>,
    %c0_22 = arith.constant 0 : index
    %c1 = arith.constant 1 : index
    %c0_23 = arith.constant 0 : index
    %c0_24 = arith.constant 0 : index
    %49 = vector.load %arg4[%c0_22, %c1, %c0_23, %c0_24] : memref<1x4x8x128xf32, #tpu.memory_space<vmem>>, vector<1x1x8x128xf32>
    %50 = vector.shape_cast %49 : vector<1x1x8x128xf32> to vector<8x128xf32>
    %51 = vector.shape_cast %36 : vector<32x128xf32> to vector<4x8x128xf32>
    %cst_25 = arith.constant dense<0.000000e+00> : vector<8x128xf32>
    %52 = vector.multi_reduction <add>, %51, %cst_25 [0] : vector<4x8x128xf32> to vector<8x128xf32>
    %53 = arith.addf %50, %52 : vector<8x128xf32>
    %c0_26 = arith.constant 0 : index
    %c1_27 = arith.constant 1 : index
    %c0_28 = arith.constant 0 : index
    %c0_29 = arith.constant 0 : index
    %54 = vector.load %arg4[%c0_26, %c1_27, %c0_28, %c0_29] : memref<1x4x8x128xf32, #tpu.memory_space<vmem>>, vector<1x1x8x128xf32>
    %55 = vector.shape_cast %54 : vector<1x1x8x128xf32> to vector<8x128xf32>
    %56 = vector.shape_cast %53 : vector<8x128xf32> to vector<1x1x8x128xf32>
    tpu.vector_store %arg4[%c0_26, %c1_27, %c0_28, %c0_29], %56 {strides = array<i32>} : memref<1x4x8x128xf32, #tpu.memory_space<vmem>>, vector<1x1x8x128xf32>,
    %c0_30 = arith.constant 0 : index
    %c2 = arith.constant 2 : index
    %c0_31 = arith.constant 0 : index
    %c0_32 = arith.constant 0 : index
    %57 = vector.load %arg4[%c0_30, %c2, %c0_31, %c0_32] : memref<1x4x8x128xf32, #tpu.memory_space<vmem>>, vector<1x1x8x128xf32>
    %58 = vector.shape_cast %57 : vector<1x1x8x128xf32> to vector<8x128xf32>
    %59 = vector.shape_cast %38 : vector<32x128xf32> to vector<4x8x128xf32>
    %cst_33 = arith.constant dense<0.000000e+00> : vector<8x128xf32>
    %60 = vector.multi_reduction <add>, %59, %cst_33 [0] : vector<4x8x128xf32> to vector<8x128xf32>
    %61 = arith.addf %58, %60 : vector<8x128xf32>
    %c0_34 = arith.constant 0 : index
    %c2_35 = arith.constant 2 : index
    %c0_36 = arith.constant 0 : index
    %c0_37 = arith.constant 0 : index
    %62 = vector.load %arg4[%c0_34, %c2_35, %c0_36, %c0_37] : memref<1x4x8x128xf32, #tpu.memory_space<vmem>>, vector<1x1x8x128xf32>
    %63 = vector.shape_cast %62 : vector<1x1x8x128xf32> to vector<8x128xf32>
    %64 = vector.shape_cast %61 : vector<8x128xf32> to vector<1x1x8x128xf32>
    tpu.vector_store %arg4[%c0_34, %c2_35, %c0_36, %c0_37], %64 {strides = array<i32>} : memref<1x4x8x128xf32, #tpu.memory_space<vmem>>, vector<1x1x8x128xf32>,
    %c0_38 = arith.constant 0 : index
    %c3 = arith.constant 3 : index
    %c0_39 = arith.constant 0 : index
    %c0_40 = arith.constant 0 : index
    %65 = vector.load %arg4[%c0_38, %c3, %c0_39, %c0_40] : memref<1x4x8x128xf32, #tpu.memory_space<vmem>>, vector<1x1x8x128xf32>
    %66 = vector.shape_cast %65 : vector<1x1x8x128xf32> to vector<8x128xf32>
    %67 = vector.shape_cast %40 : vector<32x128xf32> to vector<4x8x128xf32>
    %cst_41 = arith.constant dense<0.000000e+00> : vector<8x128xf32>
    %68 = vector.multi_reduction <add>, %67, %cst_41 [0] : vector<4x8x128xf32> to vector<8x128xf32>
    %69 = arith.addf %66, %68 : vector<8x128xf32>
    %c0_42 = arith.constant 0 : index
    %c3_43 = arith.constant 3 : index
    %c0_44 = arith.constant 0 : index
    %c0_45 = arith.constant 0 : index
    %70 = vector.load %arg4[%c0_42, %c3_43, %c0_44, %c0_45] : memref<1x4x8x128xf32, #tpu.memory_space<vmem>>, vector<1x1x8x128xf32>
    %71 = vector.shape_cast %70 : vector<1x1x8x128xf32> to vector<8x128xf32>
    %72 = vector.shape_cast %69 : vector<8x128xf32> to vector<1x1x8x128xf32>
    tpu.vector_store %arg4[%c0_42, %c3_43, %c0_44, %c0_45], %72 {strides = array<i32>} : memref<1x4x8x128xf32, #tpu.memory_space<vmem>>, vector<1x1x8x128xf32>,
    return
  }
  func.func @transform_0(%arg0: i32, %arg1: i32) -> (i32, i32) {
    %c1_i32 = arith.constant 1 : i32
    %0 = arith.muli %arg0, %c1_i32 : i32
    %1 = arith.addi %0, %arg1 : i32
    %c0_i32 = arith.constant 0 : i32
    %2 = arith.minsi %1, %c0_i32 : i32
    %c0_i32_0 = arith.constant 0 : i32
    %c0_i32_1 = arith.constant 0 : i32
    return %2, %c0_i32_0 : i32, i32
  }
  func.func @transform_1(%arg0: i32, %arg1: i32) -> (i32, i32) {
    %c1_i32 = arith.constant 1 : i32
    %0 = arith.muli %arg0, %c1_i32 : i32
    %1 = arith.addi %0, %arg1 : i32
    %c0_i32 = arith.constant 0 : i32
    %2 = arith.minsi %1, %c0_i32 : i32
    %c0_i32_0 = arith.constant 0 : i32
    %c0_i32_1 = arith.constant 0 : i32
    return %2, %c0_i32_0 : i32, i32
  }
  func.func @transform_2(%arg0: i32, %arg1: i32) -> (i32, i32, i32, i32) {
    %c0_i32 = arith.constant 0 : i32
    %c0_i32_0 = arith.constant 0 : i32
    %c0_i32_1 = arith.constant 0 : i32
    %c0_i32_2 = arith.constant 0 : i32
    return %arg0, %c0_i32, %c0_i32_0, %c0_i32_1 : i32, i32, i32, i32
  }
}

</mosaic_0001>

<bundles_post_ra>
// kernel: tpu_custom_call.1
= control target key start
LH: loop header
LB: loop body
LE: loop exit
PB: predicated region body
PF: predicated region fallthrough
CT: control target
= control target key end

     0   :  { %7 = vsyncpa [#allocation3], 0  ;;  %s819_s0 = inlined_call_operand.hbm [shape: f32[1,128], index: 0, kind: input, shape index: {}]   ;;  %s820_s1 = inlined_call_operand.vmem [shape: s8[1,128], index: 1, kind: input, shape index: {}]   ;;  %s821_s2 = inlined_call_operand.hbm [shape: f32[1,4,8,128], index: 2, kind: output, shape index: {}]  }
   0x1   :  { %8 = vsyncpa [#allocation4], 0 }
   0x2   :  { %19 = vsyncadd [#allocation3], 496  ;;  %s435_s9 = smov [#allocation2]  }
   0x3   :  { %s23_s10 = sshll.u32 %s435_s9, 4  ;;  %s24_s10 = int_to_ptr.vmem [resolvable:$true] %s23_s10 }
   0x4   :  { %s399_s11 = scalar_lea.vmem %s24_s10, 16  ;;  %s403_s12 = scalar_lea.vmem %s24_s10, 512 }
   0x5   :  { %p400_p0 = scmp.ne.s32.totalorder %s24_s10, %s399_s11  ;;  %p404_p1 = scmp.lt.s32.totalorder %s24_s10, %s24_s10 }
   0x6   :  { %p405_p2 = scmp.lt.s32.totalorder %s403_s12, %s399_s11 }
   0x8   :  { %p406_p3 = por %p405_p2, %p404_p1 }
   0xa   :  { %p407_p4 = pnand %p406_p3, %p400_p0 }
   0xc   :  { %410 = shalt.err (!%p407_p4)
}
   0xd   :  { %s436_s13 = smov 16   ;;  %s437_s14 = smov 1  }
   0xe   :  { %29 = dma.hbm_to_vmem [thread:$0]  %s819_s0, 16, %s24_s10, [#allocation3], %s436_s13, %s436_s13, %s437_s14  }
   0xf   :  { %431 = dma.done.wait [#allocation3], 512  }
  0x10   :  { %432 = vsyncadd [#allocation3], 4294966784  ;;  %v126_v0 = vlaneseq  ;;  %v92_v9 = vld [vmem:[%s820_s1] sm:$0x1]  ;;  %v93_v10 = vld [vmem:[%s820_s1 + $0x1] sm:$0x1] }
  0x11   :  { %v94_v11 = vld [vmem:[%s820_s1 + $0x2] sm:$0x1]  ;;  %v95_v13 = vld [vmem:[%s820_s1 + $0x3] sm:$0x1]  ;;  %v96_v14 = vld [vmem:[%s820_s1 + $0x4] sm:$0x1]  ;;  %v100_v16 = vunpack.c.0.s8 %v92_v9  ;;  %v101_v17 = vunpack.c.0.s8 %v93_v10 }
  0x12   :  { %v127_v1 = vshrl.u32 %v126_v0, 7  ;;  %v141_v2 = vand.u32 127, %v126_v0  ;;  %v97_v15 = vld [vmem:[%s820_s1 + $0x5] sm:$0x1]  ;;  %v102_v18 = vunpack.c.0.s8 %v94_v11  ;;  %v98_v20 = vld [vmem:[%s820_s1 + $0x6] sm:$0x1]  ;;  %v103_v22 = vunpack.c.0.s8 %v95_v13 }
  0x13   :  { %v489_v21 = vld [vmem:[%s820_s1 + $0x7] sm:$0x1]  ;;  %v104_v23 = vunpack.c.0.s8 %v96_v14  ;;  %v105_v24 = vunpack.c.0.s8 %v97_v15  ;;  %v106_v26 = vunpack.c.0.s8 %v98_v20  ;;  %vm492_vm0 = vcmp.eq.s32.totalorder %v100_v16, 1  ;;  %v89_v0 = vld [vmem:[#allocation2 + $0x8] sm:$0xff]  ;;  %s440_s1 = smov [#allocation5]  }
  0x14   :  { %v128_v3 = vadd.s32 8, %v127_v1  ;;  %v129_v4 = vadd.s32 16, %v127_v1  ;;  %v131_v5 = vmul.u32 128, %v127_v1  ;;  %v130_v6 = vadd.s32 24, %v127_v1  ;;  %v88_v59 = vld [vmem:[#allocation2] sm:$0xff]  ;;  %v90_v1 = vld [vmem:[#allocation2 + $0x10] sm:$0xff] }
  0x15   :  { %v107_v27 = vunpack.c.0.s8 %v489_v21  ;;  %vm496_vm1 = vcmp.eq.s32.totalorder %v101_v17, 1  ;;  %v845_v29 = vmov 0  ;;  %vm500_vm2 = vcmp.eq.s32.totalorder %v102_v18, 1  ;;  %s346_s4 = sshll.u32 %s440_s1, 4  ;;  %s347_s4 = int_to_ptr.vmem [resolvable:$true] %s346_s4 }
  0x16   :  { %v132_v7 = vmul.u32 128, %v128_v3  ;;  %v133_v8 = vmul.u32 128, %v129_v4  ;;  %v470_v12 = vadd.s32 %v141_v2, %v131_v5  ;;  %v846_v29 = vsel %vm496_vm1, 4294967295, %v845_v29  ;;  %s411_s5 = scalar_lea.vmem %s347_s4, 512  ;;  %p416_p6 = scmp.lt.s32.totalorder %s347_s4, %s347_s4 }
  0x17   :  { %v134_v25 = vmul.u32 128, %v130_v6  ;;  %vm504_vm3 = vcmp.eq.s32.totalorder %v103_v22, 1  ;;  %v849_v31 = vmov 0  ;;  %vm508_vm4 = vcmp.eq.s32.totalorder %v104_v23, 1  ;;  %v91_v6 = vld [vmem:[#allocation2 + $0x18] sm:$0xff]  ;;  %p412_p5 = scmp.ne.s32.totalorder %s347_s4, %s411_s5  ;;  %p417_p7 = scmp.lt.s32.totalorder %s411_s5, %s411_s5 }
  0x18   :  { %v481_v19 = vadd.s32 %v141_v2, %v132_v7  ;;  %v850_v31 = vsel %vm504_vm3, 4294967295, %v849_v31  ;;  %vm512_vm5 = vcmp.eq.s32.totalorder %v105_v24, 1  ;;  %v853_v33 = vmov 0 }
  0x19   :  { %v854_v33 = vsel %vm512_vm5, 4294967295, %v853_v33  ;;  %vm516_vm6 = vcmp.eq.s32.totalorder %v106_v26, 1  ;;  %v520_v35 = vadd.s32 %v141_v2, %v133_v8  ;;  %v522_v36 = vadd.s32 %v141_v2, %v134_v25  ;;  %p418_p8 = por %p417_p7, %p416_p6 }
  0x1a   :  { %vm526_vm7 = vcmp.eq.s32.totalorder %v107_v27, 1  ;;  %v857_v37 = vmov 0  ;;  %vm824_vm8 = vcmp.lt.s32.totalorder %v470_v12, 8  ;;  %vm822_vm9 = vcmp.lt.s32.totalorder %v481_v19, 8 }
  0x1b   :  { %v858_v37 = vsel %vm526_vm7, 4294967295, %v857_v37  ;;  %vm532_vm10 = vcmp.eq.s32.totalorder %v100_v16, 0  ;;  %vm823_vm11 = vcmp.lt.s32.totalorder %v520_v35, 8  ;;  %vm825_vm12 = vcmp.lt.s32.totalorder %v522_v36, 8  ;;  %vm546_vm13 = vmand %vm492_vm0, %vm824_vm8  ;;  %p419_p9 = pnand %p418_p8, %p412_p5 }
  0x1c   :  { %v438_v39 = vmov 0   ;;  %v861_v42 = vmov 0  ;;  %vm558_vm14 = vmand %vm500_vm2, %vm822_vm9  ;;  %v863_v47 = vmov 0  ;;  %v865_v50 = vmov 0 }
  0x1d   :  { %v150_v40 = vsel %vm824_vm8, 1, %v438_v39  ;;  %v151_v41 = vsel %vm822_vm9, 1, %v438_v39  ;;  %v862_v42 = vsel %vm546_vm13, 4294967295, %v861_v42  ;;  %v152_v43 = vsel %vm823_vm11, 1, %v438_v39  ;;  %vm566_vm15 = vmand %vm508_vm4, %vm823_vm11 }
  0x1e   :  { %v153_v44 = vsel %vm825_vm12, 1, %v438_v39  ;;  %v154_v45 = vcombine.high %v150_v40, %v150_v40  ;;  %v155_v46 = vcombine.high %v151_v41, %v151_v41  ;;  %v864_v47 = vsel %vm558_vm14, 4294967295, %v863_v47  ;;  %vm589_vm4 = vmand %vm516_vm6, %vm825_vm12 }
  0x1f   :  { %v156_v48 = vcombine.high %v152_v43, %v152_v43  ;;  %v157_v49 = vcombine.high %v153_v44, %v153_v44  ;;  %v866_v50 = vsel %vm566_vm15, 4294967295, %v865_v50  ;;  %v439_v51 = vmov 0.0  }
  0x20   :  { %v206_v52 = vsel %vm546_vm13, 1.0, %v439_v51  ;;  %vm573_vm0 = vcmp.eq.s32.totalorder %v101_v17, 0  ;;  %vm577_vm2 = vcmp.ne.s32.totalorder %v154_v45, 0  ;;  %vm581_vm9 = vcmp.ne.s32.totalorder %v155_v46, 0 }
  0x21   :  { %v873_v56 = vmov 0  ;;  %v208_v57 = vsel %vm558_vm14, 1.0, %v439_v51  ;;  %v210_v58 = vsel %vm566_vm15, 1.0, %v439_v51  ;;  %vm599_vm11 = vcmp.ne.s32.totalorder %v156_v48, 0  ;;  %vm830_vm6 = vmand %vm496_vm1, %vm577_vm2 }
  0x22   :  { %v874_v56 = vsel %vm589_vm4, 4294967295, %v873_v56  ;;  %vm603_vm8 = vcmp.ne.s32.totalorder %v157_v49, 0  ;;  %v212_v62 = vsel %vm589_vm4, 1.0, %v439_v51  ;;  %vm614_vm12 = vcmp.eq.s32.totalorder %v102_v18, 0  ;;  %vm834_vm15 = vmand %vm512_vm5, %vm599_vm11 }
  0x23   :  { %v207_v2 = vsel %vm830_vm6, 1.0, %v439_v51  ;;  %vm628_vm14 = vcmp.eq.s32.totalorder %v103_v22, 0  ;;  %vm632_vm4 = vcmp.eq.s32.totalorder %v104_v23, 0  ;;  %vm636_vm13 = vcmp.eq.s32.totalorder %v105_v24, 0  ;;  %vm887_vm6 = vmand %vm504_vm3, %vm581_vm9 }
  0x24   :  { %v885_v5 = vmov 0  ;;  %v209_v7 = vsel %vm887_vm6, 1.0, %v439_v51  ;;  %v259_v8 = vcombine.low %v206_v52, %v207_v2  ;;  %vm650_vm1 = vcmp.eq.s32.totalorder %v106_v26, 0 }
  0x25   :  { %v886_v5 = vsel %vm636_vm13, 4294967295, %v885_v5  ;;  %v178_v10 = vsub.f32 0.0, %v88_v59  ;;  %vm835_vm13 = vmand %vm526_vm7, %vm603_vm8  ;;  %v211_v11 = vsel %vm834_vm15, 1.0, %v439_v51  ;;  %v260_v13 = vcombine.low %v208_v57, %v209_v7 }
  0x26   :  { %v179_v14 = vsub.f32 0.0, %v89_v0  ;;  %v180_v15 = vsub.f32 0.0, %v90_v1  ;;  %v213_v16 = vsel %vm835_vm13, 1.0, %v439_v51  ;;  %v261_v17 = vcombine.low %v210_v58, %v211_v11  ;;  %vm836_vm15 = vmand %vm573_vm0, %vm577_vm2 }
  0x27   :  { %vm890_vm6 = vcmp.lt.s32.totalorder %v470_v12, 8  ;;  %v181_v20 = vsub.f32 0.0, %v91_v6  ;;  %v363_v22 = vmul.f32 -1.442695, %v178_v10  ;;  %v262_v23 = vcombine.low %v212_v62, %v213_v16 }
  0x28   :  { %vm674_vm3 = vmand %vm532_vm10, %vm890_vm6  ;;  %v267_v24 = vadd.f32 %v260_v13, %v259_v8  ;;  %v364_v12 = vmul.f32 -1.442695, %v179_v14  ;;  %vm893_vm13 = vcmp.lt.s32.totalorder %v481_v19, 8  ;;  %v215_v28 = vsel %vm836_vm15, 1.0, %v439_v51 }
  0x29   :  { %v214_v25 = vsel %vm674_vm3, 1.0, %v439_v51  ;;  %vm689_vm10 = vmand %vm614_vm12, %vm893_vm13  ;;  %375 = vpow2.f32 %v363_v22  ;;  %v365_v30 = vmul.f32 -1.442695, %v180_v15  ;;  %v366_v32 = vmul.f32 -1.442695, %v181_v20 }
  0x2a   :  { %v268_v34 = vadd.f32 %v267_v24, %v261_v17  ;;  %vm839_vm6 = vmand %vm628_vm14, %vm581_vm9  ;;  %v216_v19 = vsel %vm689_vm10, 1.0, %v439_v51  ;;  %v282_v38 = vcombine.low %v214_v25, %v215_v28  ;;  %377 = vpow2.f32 %v364_v12 }
  0x2b   :  { %vm708_vm12 = vcmp.eq.s32.totalorder %v107_v27, 0  ;;  %v896_v39 = vmov 0  ;;  %vm898_vm13 = vcmp.lt.s32.totalorder %v520_v35, 8  ;;  %v217_v41 = vsel %vm839_vm6, 1.0, %v439_v51 }
  0x2c   :  { %v897_v39 = vsel %vm708_vm12, 4294967295, %v896_v39  ;;  %vm716_vm15 = vmand %vm632_vm4, %vm898_vm13  ;;  %379 = vpow2.f32 %v365_v30  ;;  %v269_v21 = vadd.f32 %v268_v34, %v262_v23  ;;  %vm901_vm7 = vnez %v886_v5 }
  0x2d   :  { %vm841_vm5 = vmand %vm901_vm7, %vm599_vm11  ;;  %v218_v27 = vsel %vm716_vm15, 1.0, %v439_v51  ;;  %v283_v35 = vcombine.low %v216_v19, %v217_v41  ;;  %381 = vpow2.f32 %v366_v32  ;;  %vm902_vm4 = vcmp.lt.s32.totalorder %v522_v36, 8 }
  0x2e   :  { %vm737_vm13 = vmand %vm650_vm1, %vm902_vm4  ;;  %v219_v44 = vsel %vm841_vm5, 1.0, %v439_v51  ;;  %271 = vst [vmem:[#allocation5] sm:$0xff] %v269_v21  ;;  %vm905_vm1 = vnez %v862_v42  ;;  %vm906_vm4 = vnez %v864_v47 }
  0x2f   :  { %vm840_vm6 = vmand %vm708_vm12, %vm603_vm8  ;;  %v220_v36 = vsel %vm737_vm13, 1.0, %v439_v51  ;;  %v284_v45 = vcombine.low %v218_v27, %v219_v44  ;;  %v290_v46 = vadd.f32 %v283_v35, %v282_v38  ;;  %vm913_vm12 = vnez %v874_v56 }
  0x30   :  { %v221_v48 = vsel %vm840_vm6, 1.0, %v439_v51  ;;  %vm907_vm6 = vnez %v846_v29 }
  0x31   :  { %v285_v49 = vcombine.low %v220_v36, %v221_v48  ;;  %v291_v52 = vadd.f32 %v290_v46, %v284_v45  ;;  %vm908_vm5 = vmand %vm907_vm6, %vm577_vm2 }
  0x33   :  { %v292_v57 = vadd.f32 %v291_v52, %v285_v49 }
  0x35   :  { %294 = vst [vmem:[#allocation5 + $0x8] sm:$0xff] %v292_v57 }
  0x36   :  { %v376_v58 = vpop.eup %375 }
  0x37   :  { %v378_v59 = vpop.eup %377  ;;  %v194_v62 = vadd.f32 1.0, %v376_v58 }
  0x38   :  { %v195_v0 = vadd.f32 1.0, %v378_v59 }
  0x39   :  { %v380_v63 = vpop.eup %379  ;;  %383 = vrcp.f32 %v194_v62 }
  0x3a   :  { %v382_v1 = vpop.eup %381  ;;  %v196_v2 = vadd.f32 1.0, %v380_v63  ;;  %385 = vrcp.f32 %v195_v0 }
  0x3b   :  { %v197_v4 = vadd.f32 1.0, %v382_v1 }
  0x3c   :  { %387 = vrcp.f32 %v196_v2 }
  0x3d   :  { %389 = vrcp.f32 %v197_v4 }
  0x46   :  { %v384_v6 = vpop.eup %383 }
  0x47   :  { %v386_v7 = vpop.eup %385  ;;  %v226_v51 = vcombine.high %v384_v6, %v384_v6  ;;  %v234_v8 = vsel %vm905_vm1, %v384_v6, 0.0  ;;  %v242_v13 = vsel %vm674_vm3, %v384_v6, 0.0  ;;  %vm909_vm1 = vnez %v866_v50 }
  0x48   :  { %v227_v10 = vcombine.high %v386_v7, %v386_v7  ;;  %v236_v11 = vsel %vm906_vm4, %v386_v7, 0.0  ;;  %v244_v14 = vsel %vm689_vm10, %v386_v7, 0.0  ;;  %vm910_vm4 = vmand %vm573_vm0, %vm577_vm2  ;;  %vm911_vm3 = vnez %v850_v31 }
  0x49   :  { %v388_v9 = vpop.eup %387  ;;  %v235_v42 = vsel %vm908_vm5, %v226_v51, 0.0  ;;  %v243_v47 = vsel %vm910_vm4, %v226_v51, 0.0  ;;  %vm912_vm10 = vmand %vm911_vm3, %vm581_vm9  ;;  %vm914_vm5 = vnez %v854_v33  ;;  %vm917_vm2 = vnez %v858_v37 }
  0x4a   :  { %v390_v15 = vpop.eup %389  ;;  %v228_v16 = vcombine.high %v388_v9, %v388_v9  ;;  %v238_v17 = vsel %vm909_vm1, %v388_v9, 0.0  ;;  %v237_v29 = vsel %vm912_vm10, %v227_v10, 0.0  ;;  %v305_v22 = vcombine.low %v234_v8, %v235_v42  ;;  %vm915_vm6 = vmand %vm914_vm5, %vm599_vm11 }
  0x4b   :  { %v229_v18 = vcombine.high %v390_v15, %v390_v15  ;;  %v240_v20 = vsel %vm913_vm12, %v390_v15, 0.0  ;;  %v306_v53 = vcombine.low %v236_v11, %v237_v29  ;;  %vm916_vm0 = vmand %vm628_vm14, %vm581_vm9  ;;  %v246_v54 = vsel %vm716_vm15, %v388_v9, 0.0 }
  0x4c   :  { %v239_v50 = vsel %vm915_vm6, %v228_v16, 0.0  ;;  %v245_v31 = vsel %vm916_vm0, %v227_v10, 0.0  ;;  %vm918_vm12 = vmand %vm917_vm2, %vm603_vm8  ;;  %v248_v55 = vsel %vm737_vm13, %v390_v15, 0.0  ;;  %vm920_vm9 = vnez %v897_v39 }
  0x4d   :  { %v241_v33 = vsel %vm918_vm12, %v229_v18, 0.0  ;;  %v307_v56 = vcombine.low %v238_v17, %v239_v50  ;;  %vm919_vm1 = vmand %vm901_vm7, %vm599_vm11  ;;  %v313_v24 = vadd.f32 %v306_v53, %v305_v22  ;;  %v328_v25 = vcombine.low %v242_v13, %v243_v47 }
  0x4e   :  { %v247_v3 = vsel %vm919_vm1, %v228_v16, 0.0  ;;  %v308_v23 = vcombine.low %v240_v20, %v241_v33  ;;  %vm921_vm14 = vmand %vm920_vm9, %vm603_vm8  ;;  %v329_v12 = vcombine.low %v244_v14, %v245_v31 }
  0x4f   :  { %v249_v37 = vsel %vm921_vm14, %v229_v18, 0.0  ;;  %v330_v26 = vcombine.low %v246_v54, %v247_v3  ;;  %v314_v28 = vadd.f32 %v313_v24, %v307_v56 }
  0x50   :  { %v331_v5 = vcombine.low %v248_v55, %v249_v37  ;;  %v336_v30 = vadd.f32 %v329_v12, %v328_v25 }
  0x51   :  { %v315_v60 = vadd.f32 %v314_v28, %v308_v23 }
  0x52   :  { %v337_v32 = vadd.f32 %v336_v30, %v330_v26 }
  0x53   :  { %317 = vst [vmem:[#allocation5 + $0x10] sm:$0xff] %v315_v60 }
  0x54   :  { %v338_v34 = vadd.f32 %v337_v32, %v331_v5 }
  0x56   :  { %340 = vst [vmem:[#allocation5 + $0x18] sm:$0xff] %v338_v34 }
  0x57   :  { %422 = shalt.err (!%p419_p9)
}
  0x58   :  { %s441_s6 = smov 128   ;;  %s442_s7 = smov 8  }
  0x59   :  { %352 = dma.vmem_to_hbm [thread:$0]  %s347_s4, 512, %s821_s2, [#allocation4], %s441_s6, %s441_s6, %s442_s7  }
  0x5a   :  { %433 = dma.done.wait [#allocation4], 512  }
  0x5b   :  { %434 = vsyncadd [#allocation4], 4294966784 }
  0x5c   :  { %356 = vsyncpa [#allocation3], 1 }
  0x5d   :  { %357 = vsyncpa [#allocation4], 1 }

</bundles_post_ra>
